<compile_context>
chip_gen: v7x
topology: tpu7x:2x2x1
jax: 0.10.0
libtpu: 0.0.40
codegen_flags: <defaults>
</compile_context>

<pallas_src>
import jax
import jax.numpy as jnp
from jax.experimental import pallas as pl
from jax.experimental.pallas import tpu as pltpu


def _round_up(x, m):
    return (x + m - 1) // m * m


_OUT_W = 128  # lane-dense packed-output width (>= num_classes + 1)


# --------------------------------------------------------------------------- #
# Host-side parameter packing
# --------------------------------------------------------------------------- #
def pack_params(params, weight_dtype=jnp.bfloat16):
    """Packs weights into 4 VMEM blobs (weight_dtype) + one (8,128) f32 bias blob.

    Weight blobs (no bias header rows — biases live in the f32 bias blob):
      enc  : (din_p + 6H, 3H)  rows [0:din_p]=W1(block-diag), then W2, W3
      att  : (5H, H)           rows [0:3H]=W1, then W2, W3
      fatt : (H, 3)
      head : (H, 128)          cols [0:C]=fc_out_1, col [C]=fc_out_2, rest 0

    Bias blob rows: 0-2 enc layers (width 3H), 3-5 att layers (width H),
                    6 fc_att (width 3), 7 head (width C+1); all zero-padded to 128.
    """
    mods = ("audio", "text", "video")
    H = params["audio"][0][0].shape[1]
    H3 = 3 * H
    in_dims = [params[m][0][0].shape[0] for m in mods]
    din = sum(in_dims)
    din_p = _round_up(din, 8)
    C = params["fc_out_1"][0].shape[1]
    assert C + 1 <= _OUT_W

    def block_diag(mats):
        rows = sum(m.shape[0] for m in mats)
        cols = sum(m.shape[1] for m in mats)
        out = jnp.zeros((rows, cols), jnp.float32)
        r = c = 0
        for m in mats:
            out = out.at[r:r + m.shape[0], c:c + m.shape[1]].set(m)
            r += m.shape[0]
            c += m.shape[1]
        return out

    # --- fused (block-diagonal) modality encoders ----------------------------
    w1 = block_diag([params[m][0][0] for m in mods])            # (din, 3H)
    w1 = jnp.pad(w1, ((0, din_p - din), (0, 0)))                # (din_p, 3H)
    w2 = block_diag([params[m][1][0] for m in mods])            # (3H, 3H)
    w3 = block_diag([params[m][2][0] for m in mods])            # (3H, 3H)
    enc_w = jnp.concatenate([w1, w2, w3], axis=0).astype(weight_dtype)

    # --- attention MLP --------------------------------------------------------
    (aw1, ab1), (aw2, ab2), (aw3, ab3) = params["att_mlp"]
    att_w = jnp.concatenate([aw1, aw2, aw3], axis=0).astype(weight_dtype)

    # --- fc_att ---------------------------------------------------------------
    faw, fab = params["fc_att"]                                 # (H,3), (1,3)
    fatt_w = faw.astype(weight_dtype)

    # --- fused, lane-dense output head [fc_out_1 | fc_out_2 | 0...] ----------
    f1w, f1b = params["fc_out_1"]
    f2w, f2b = params["fc_out_2"]
    head_w = jnp.pad(jnp.concatenate([f1w, f2w], axis=1),
                     ((0, 0), (0, _OUT_W - (C + 1)))).astype(weight_dtype)

    # --- f32 bias blob (8, 128) ----------------------------------------------
    def row(b):
        b = b.reshape(1, -1)
        return jnp.pad(b, ((0, 0), (0, _OUT_W - b.shape[1])))

    enc_b = [jnp.concatenate([params[m][li][1] for m in mods], axis=1)
             for li in range(3)]                                # each (1, 3H)
    bias = jnp.concatenate(
        [row(enc_b[0]), row(enc_b[1]), row(enc_b[2]),
         row(ab1), row(ab2), row(ab3),
         row(fab),
         row(jnp.concatenate([f1b, f2b], axis=1))],
        axis=0).astype(jnp.float32)                             # (8, 128)

    return dict(enc=enc_w, att=att_w, fatt=fatt_w, head=head_w, bias=bias,
                din=din, din_p=din_p, hidden=H, num_classes=C)


# --------------------------------------------------------------------------- #
# Kernel
# --------------------------------------------------------------------------- #
def _build_kernel(din_p, hidden):
    H = hidden
    H3 = 3 * H

    def kernel(x_ref, enc_ref, att_ref, fatt_ref, head_ref, bias_ref, out_ref):
        def matmul(h, w):
            return jnp.dot(h.astype(w.dtype), w,
                           preferred_element_type=jnp.float32)

        biases = bias_ref[...]                      # (8, 128) f32, one load

        # Block-diagonal fused modality encoders -> h = [ah | th | vh] (bb, 3H)
        h = x_ref[...]
        r = 0
        for li, k in enumerate((din_p, H3, H3)):
            h = jnp.maximum(matmul(h, enc_ref[r:r + k, :])
                            + biases[li:li + 1, 0:H3], 0.0)
            r += k

        # Attention MLP on the (already contiguous) multi_hidden1     (bb, H)
        a = h
        r = 0
        for li, k in enumerate((H3, H, H)):
            a = jnp.maximum(matmul(a, att_ref[r:r + k, :])
                            + biases[3 + li:4 + li, 0:H], 0.0)
            r += k

        # fc_att -> (bb, 3) in a single matmul
        att = matmul(a, fatt_ref[...]) + biases[6:7, 0:3]

        # fused_feat = stack(hidden, dim=2) @ att[..., None]
        #            = sum_m hidden_m * att[:, m]                     (bb, H)
        feat = (h[:, 0:H] * att[:, 0:1]
                + h[:, H:2 * H] * att[:, 1:2]
                + h[:, 2 * H:3 * H] * att[:, 2:3])

        # Fused, lane-dense head [fc_out_1 | fc_out_2 | 0] -> (bb, 128);
        # one full-width (unmasked) store.
        out_ref[...] = (matmul(feat, head_ref[...])
                        + biases[7:8, :]).astype(out_ref.dtype)

    return kernel


# --------------------------------------------------------------------------- #
# Wrapper
# --------------------------------------------------------------------------- #
def attention_forward(xa, xt, xv, packed, *, block_b=1024):
    """Runs the fused Attention forward pass. Returns (emos_out, vals_out)."""
    B = xa.shape[0]
    din = packed["din"]
    din_p = packed["din_p"]
    H = packed["hidden"]
    C = packed["num_classes"]

    # Concatenate + pad inputs host-side (makes multi_hidden1 contiguous and
    # the first encoder layer one block-diagonal matmul).
    x = jnp.concatenate([xa, xt, xv], axis=1).astype(jnp.float32)

    # Batch tiling: pad B to 8 sublanes; guarantee >=2 grid steps when the
    # batch allows so "parallel" actually shards across v7x's 2 TensorCores.
    B8 = _round_up(B, 8)
    if B8 >= 16:
        bb = min(block_b, _round_up((B8 + 1) // 2, 8))
    else:
        bb = B8
    Bp = _round_up(B8, bb)
    x = jnp.pad(x, ((0, Bp - B), (0, din_p - din)))
    # NOTE: padded batch rows compute relu(bias) garbage; they are sliced off
    # below and never reduced over inside the kernel.

    kernel = _build_kernel(din_p, H)

    def weight_spec(arr):
        # Constant index_map -> fetched once, never re-DMAed across grid steps.
        return pl.BlockSpec(arr.shape, lambda i: (0, 0))

    H3 = 3 * H
    flops = 2 * Bp * (din_p * H3 + 2 * H3 * H3 + H3 * H + 2 * H * H
                      + H * 3 + H * _OUT_W)
    bytes_accessed = (x.size * 4 + Bp * _OUT_W * 4
                      + sum(int(packed[k].size) * packed[k].dtype.itemsize
                            for k in ("enc", "att", "fatt", "head", "bias")))

    out = pl.pallas_call(
        kernel,
        out_shape=jax.ShapeDtypeStruct((Bp, _OUT_W), jnp.float32),
        grid=(Bp // bb,),
        in_specs=[
            pl.BlockSpec((bb, din_p), lambda i: (i, 0)),
            weight_spec(packed["enc"]),
            weight_spec(packed["att"]),
            weight_spec(packed["fatt"]),
            weight_spec(packed["head"]),
            weight_spec(packed["bias"]),
        ],
        out_specs=pl.BlockSpec((bb, _OUT_W), lambda i: (i, 0)),
        compiler_params=pltpu.CompilerParams(
            dimension_semantics=("parallel",),
            vmem_limit_bytes=32 << 20),
        cost_estimate=pl.CostEstimate(flops=flops, transcendentals=0,
                                      bytes_accessed=bytes_accessed),
    )(x, packed["enc"], packed["att"], packed["fatt"], packed["head"],
      packed["bias"])

    emos = out[:B, :C]
    vals = out[:B, C:C + 1]
    return emos, vals


# --------------------------------------------------------------------------- #
# Parameter construction + pure-JAX reference
# --------------------------------------------------------------------------- #
def _make_linear(key, in_dim, out_dim):
    kw, kb = jax.random.split(key)
    w = jax.random.normal(kw, (in_dim, out_dim), jnp.float32) * 0.1
    b = jax.random.normal(kb, (1, out_dim), jnp.float32) * 0.01
    return w, b


def make_params(key, audio_dim, text_dim, video_dim, hidden_dim, num_classes):
    keys = jax.random.split(key, 32)
    it = iter(keys)

    def mlp(in_dim):
        return [
            _make_linear(next(it), in_dim, hidden_dim),
            _make_linear(next(it), hidden_dim, hidden_dim),
            _make_linear(next(it), hidden_dim, hidden_dim),
        ]

    return {
        "audio": mlp(audio_dim),
        "text": mlp(text_dim),
        "video": mlp(video_dim),
        "att_mlp": mlp(hidden_dim * 3),
        "fc_att": _make_linear(next(it), hidden_dim, 3),
        "fc_out_1": _make_linear(next(it), hidden_dim, num_classes),
        "fc_out_2": _make_linear(next(it), hidden_dim, 1),
    }


def reference_forward(xa, xt, xv, params):
    """Pure-JAX reference mirroring the PyTorch module (eval-mode dropout)."""
    # TODO(synk): nn.Dropout is identity here (inference semantics); no RNG path.
    def enc(x, layers):
        for w, b in layers:
            x = jnp.maximum(x @ w + b, 0.0)
        return x

    ah = enc(xa, params["audio"])
    th = enc(xt, params["text"])
    vh = enc(xv, params["video"])
    mh1 = jnp.concatenate([ah, th, vh], axis=1)
    att = enc(mh1, params["att_mlp"])
    faw, fab = params["fc_att"]
    att = att @ faw + fab                           # (B, 3)
    mh2 = jnp.stack([ah, th, vh], axis=2)           # (B, H, 3)
    feat = jnp.matmul(mh2, att[..., None])[..., 0]  # (B, H)
    f1w, f1b = params["fc_out_1"]
    f2w, f2b = params["fc_out_2"]
    return feat @ f1w + f1b, feat @ f2w + f2b


# --------------------------------------------------------------------------- #
# Demo / self-check
# --------------------------------------------------------------------------- #
if __name__ == "__main__":
    B = 2
    audio_dim, text_dim, video_dim = 20, 24, 28
    hidden_dim, num_classes = 32, 4

    key = jax.random.PRNGKey(0)
    k_params, k_a, k_t, k_v = jax.random.split(key, 4)

    params = make_params(k_params, audio_dim, text_dim, video_dim,
                         hidden_dim, num_classes)
    packed_bf16 = pack_params(params)                              # bf16 weights (default)
    packed_f32 = pack_params(params, weight_dtype=jnp.float32)     # exact-check path

    xa = jax.random.normal(k_a, (B, audio_dim), jnp.float32)
    xt = jax.random.normal(k_t, (B, text_dim), jnp.float32)
    xv = jax.random.normal(k_v, (B, video_dim), jnp.float32)

    ref_emos, ref_vals = reference_forward(xa, xt, xv, params)

    # f32-weight path: exact-tolerance check of the kernel math.
    emos_f32, vals_f32 = attention_forward(xa, xt, xv, packed_f32)
    jax.block_until_ready((emos_f32, vals_f32))
    assert emos_f32.shape == (B, num_classes) and vals_f32.shape == (B, 1)
    assert jnp.allclose(emos_f32, ref_emos, rtol=1e-3, atol=1e-3)
    assert jnp.allclose(vals_f32, ref_vals, rtol=1e-3, atol=1e-3)

    # bf16-weight (default) path: halved weight DMA, f32 biases; loose tolerance.
    emos_bf, vals_bf = attention_forward(xa, xt, xv, packed_bf16)
    jax.block_until_ready((emos_bf, vals_bf))
    assert jnp.allclose(emos_bf, ref_emos, rtol=5e-2, atol=5e-2)
    assert jnp.allclose(vals_bf, ref_vals, rtol=5e-2, atol=5e-2)

    # Larger batch exercises the multi-step grid (>=2 steps -> both v7x TCs).
    B2 = 64
    k_a2, k_t2, k_v2 = jax.random.split(jax.random.PRNGKey(1), 3)
    xa2 = jax.random.normal(k_a2, (B2, audio_dim), jnp.float32)
    xt2 = jax.random.normal(k_t2, (B2, text_dim), jnp.float32)
    xv2 = jax.random.normal(k_v2, (B2, video_dim), jnp.float32)
    emos2, vals2 = attention_forward(xa2, xt2, xv2, packed_f32)
    jax.block_until_ready((emos2, vals2))
    ref_emos2, ref_vals2 = reference_forward(xa2, xt2, xv2, params)
    assert jnp.allclose(emos2, ref_emos2, rtol=1e-3, atol=1e-3)
    assert jnp.allclose(vals2, ref_vals2, rtol=1e-3, atol=1e-3)

    print("KERNEL_OK")
</pallas_src>

<mosaic_0001>
module attributes {stable_mosaic.version = 11 : i64} {
  func.func @kernel(%arg0: i32, %arg1: memref<8x72xf32, #tpu.memory_space<vmem>>, %arg2: memref<264x96xf32, #tpu.memory_space<vmem>>, %arg3: memref<160x32xf32, #tpu.memory_space<vmem>>, %arg4: memref<32x3xf32, #tpu.memory_space<vmem>>, %arg5: memref<32x128xf32, #tpu.memory_space<vmem>>, %arg6: memref<8x128xf32, #tpu.memory_space<vmem>>, %arg7: memref<8x128xf32, #tpu.memory_space<vmem>>) attributes {dimension_semantics = [#tpu.dimension_semantics<parallel>], iteration_bounds = array<i64: 1>, scalar_prefetch = 0 : i64, scratch_operands = 0 : i64, tpu.core_type = #tpu.core_type<tc>, window_params = [{transform_indices = @transform_0, window_bounds = array<i64: 8, 72>}, {pipeline_mode = #tpu.pipeline_mode<synchronous>, transform_indices = @transform_1, window_bounds = array<i64: 264, 96>}, {pipeline_mode = #tpu.pipeline_mode<synchronous>, transform_indices = @transform_2, window_bounds = array<i64: 160, 32>}, {pipeline_mode = #tpu.pipeline_mode<synchronous>, transform_indices = @transform_3, window_bounds = array<i64: 32, 3>}, {pipeline_mode = #tpu.pipeline_mode<synchronous>, transform_indices = @transform_4, window_bounds = array<i64: 32, 128>}, {pipeline_mode = #tpu.pipeline_mode<synchronous>, transform_indices = @transform_5, window_bounds = array<i64: 8, 128>}, {transform_indices = @transform_6, window_bounds = array<i64: 8, 128>}]} {
    %c0 = arith.constant 0 : index
    %c0_0 = arith.constant 0 : index
    %0 = vector.load %arg6[%c0, %c0_0] : memref<8x128xf32, #tpu.memory_space<vmem>>, vector<8x128xf32>
    %c0_1 = arith.constant 0 : index
    %c0_2 = arith.constant 0 : index
    %1 = vector.load %arg1[%c0_1, %c0_2] : memref<8x72xf32, #tpu.memory_space<vmem>>, vector<8x72xf32>
    %c0_3 = arith.constant 0 : index
    %c0_4 = arith.constant 0 : index
    %2 = vector.load %arg2[%c0_3, %c0_4] : memref<264x96xf32, #tpu.memory_space<vmem>>, vector<72x96xf32>
    %cst = arith.constant dense<0.000000e+00> : vector<8x96xf32>
    %3 = tpu.matmul %1, %2, %cst {dimension_numbers = #tpu.dot_dimension_numbers<[1], [0], [0], [1], [0, 0, 1, 1], [], []>} : vector<8x72xf32>, vector<72x96xf32>, vector<8x96xf32> -> vector<8x96xf32>
    %4 = vector.extract_strided_slice %0 {offsets = [0, 0], sizes = [1, 96], strides = [1, 1]} : vector<8x128xf32> to vector<1x96xf32>
    %5 = vector.broadcast %4 : vector<1x96xf32> to vector<8x96xf32>
    %6 = arith.addf %3, %5 : vector<8x96xf32>
    %cst_5 = arith.constant 0.000000e+00 : f32
    %7 = vector.broadcast %cst_5 : f32 to vector<8x96xf32>
    %8 = arith.maximumf %6, %7 : vector<8x96xf32>
    %c72 = arith.constant 72 : index
    %c0_6 = arith.constant 0 : index
    %9 = vector.load %arg2[%c72, %c0_6] : memref<264x96xf32, #tpu.memory_space<vmem>>, vector<96x96xf32>
    %cst_7 = arith.constant dense<0.000000e+00> : vector<8x96xf32>
    %10 = tpu.matmul %8, %9, %cst_7 {dimension_numbers = #tpu.dot_dimension_numbers<[1], [0], [0], [1], [0, 0, 1, 1], [], []>} : vector<8x96xf32>, vector<96x96xf32>, vector<8x96xf32> -> vector<8x96xf32>
    %11 = vector.extract_strided_slice %0 {offsets = [1, 0], sizes = [1, 96], strides = [1, 1]} : vector<8x128xf32> to vector<1x96xf32>
    %12 = vector.broadcast %11 : vector<1x96xf32> to vector<8x96xf32>
    %13 = arith.addf %10, %12 : vector<8x96xf32>
    %cst_8 = arith.constant 0.000000e+00 : f32
    %14 = vector.broadcast %cst_8 : f32 to vector<8x96xf32>
    %15 = arith.maximumf %13, %14 : vector<8x96xf32>
    %c168 = arith.constant 168 : index
    %c0_9 = arith.constant 0 : index
    %16 = vector.load %arg2[%c168, %c0_9] : memref<264x96xf32, #tpu.memory_space<vmem>>, vector<96x96xf32>
    %cst_10 = arith.constant dense<0.000000e+00> : vector<8x96xf32>
    %17 = tpu.matmul %15, %16, %cst_10 {dimension_numbers = #tpu.dot_dimension_numbers<[1], [0], [0], [1], [0, 0, 1, 1], [], []>} : vector<8x96xf32>, vector<96x96xf32>, vector<8x96xf32> -> vector<8x96xf32>
    %18 = vector.extract_strided_slice %0 {offsets = [2, 0], sizes = [1, 96], strides = [1, 1]} : vector<8x128xf32> to vector<1x96xf32>
    %19 = vector.broadcast %18 : vector<1x96xf32> to vector<8x96xf32>
    %20 = arith.addf %17, %19 : vector<8x96xf32>
    %cst_11 = arith.constant 0.000000e+00 : f32
    %21 = vector.broadcast %cst_11 : f32 to vector<8x96xf32>
    %22 = arith.maximumf %20, %21 : vector<8x96xf32>
    %c0_12 = arith.constant 0 : index
    %c0_13 = arith.constant 0 : index
    %23 = vector.load %arg3[%c0_12, %c0_13] : memref<160x32xf32, #tpu.memory_space<vmem>>, vector<96x32xf32>
    %cst_14 = arith.constant dense<0.000000e+00> : vector<8x32xf32>
    %24 = tpu.matmul %22, %23, %cst_14 {dimension_numbers = #tpu.dot_dimension_numbers<[1], [0], [0], [1], [0, 0, 1, 1], [], []>} : vector<8x96xf32>, vector<96x32xf32>, vector<8x32xf32> -> vector<8x32xf32>
    %25 = vector.extract_strided_slice %0 {offsets = [3, 0], sizes = [1, 32], strides = [1, 1]} : vector<8x128xf32> to vector<1x32xf32>
    %26 = vector.broadcast %25 : vector<1x32xf32> to vector<8x32xf32>
    %27 = arith.addf %24, %26 : vector<8x32xf32>
    %cst_15 = arith.constant 0.000000e+00 : f32
    %28 = vector.broadcast %cst_15 : f32 to vector<8x32xf32>
    %29 = arith.maximumf %27, %28 : vector<8x32xf32>
    %c96 = arith.constant 96 : index
    %c0_16 = arith.constant 0 : index
    %30 = vector.load %arg3[%c96, %c0_16] : memref<160x32xf32, #tpu.memory_space<vmem>>, vector<32x32xf32>
    %cst_17 = arith.constant dense<0.000000e+00> : vector<8x32xf32>
    %31 = tpu.matmul %29, %30, %cst_17 {dimension_numbers = #tpu.dot_dimension_numbers<[1], [0], [0], [1], [0, 0, 1, 1], [], []>} : vector<8x32xf32>, vector<32x32xf32>, vector<8x32xf32> -> vector<8x32xf32>
    %32 = vector.extract_strided_slice %0 {offsets = [4, 0], sizes = [1, 32], strides = [1, 1]} : vector<8x128xf32> to vector<1x32xf32>
    %33 = vector.broadcast %32 : vector<1x32xf32> to vector<8x32xf32>
    %34 = arith.addf %31, %33 : vector<8x32xf32>
    %cst_18 = arith.constant 0.000000e+00 : f32
    %35 = vector.broadcast %cst_18 : f32 to vector<8x32xf32>
    %36 = arith.maximumf %34, %35 : vector<8x32xf32>
    %c128 = arith.constant 128 : index
    %c0_19 = arith.constant 0 : index
    %37 = vector.load %arg3[%c128, %c0_19] : memref<160x32xf32, #tpu.memory_space<vmem>>, vector<32x32xf32>
    %cst_20 = arith.constant dense<0.000000e+00> : vector<8x32xf32>
    %38 = tpu.matmul %36, %37, %cst_20 {dimension_numbers = #tpu.dot_dimension_numbers<[1], [0], [0], [1], [0, 0, 1, 1], [], []>} : vector<8x32xf32>, vector<32x32xf32>, vector<8x32xf32> -> vector<8x32xf32>
    %39 = vector.extract_strided_slice %0 {offsets = [5, 0], sizes = [1, 32], strides = [1, 1]} : vector<8x128xf32> to vector<1x32xf32>
    %40 = vector.broadcast %39 : vector<1x32xf32> to vector<8x32xf32>
    %41 = arith.addf %38, %40 : vector<8x32xf32>
    %cst_21 = arith.constant 0.000000e+00 : f32
    %42 = vector.broadcast %cst_21 : f32 to vector<8x32xf32>
    %43 = arith.maximumf %41, %42 : vector<8x32xf32>
    %c0_22 = arith.constant 0 : index
    %c0_23 = arith.constant 0 : index
    %44 = vector.load %arg4[%c0_22, %c0_23] : memref<32x3xf32, #tpu.memory_space<vmem>>, vector<32x3xf32>
    %cst_24 = arith.constant dense<0.000000e+00> : vector<8x3xf32>
    %45 = tpu.matmul %43, %44, %cst_24 {dimension_numbers = #tpu.dot_dimension_numbers<[1], [0], [0], [1], [0, 0, 1, 1], [], []>} : vector<8x32xf32>, vector<32x3xf32>, vector<8x3xf32> -> vector<8x3xf32>
    %46 = vector.extract_strided_slice %0 {offsets = [6, 0], sizes = [1, 3], strides = [1, 1]} : vector<8x128xf32> to vector<1x3xf32>
    %47 = vector.broadcast %46 : vector<1x3xf32> to vector<8x3xf32>
    %48 = arith.addf %45, %47 : vector<8x3xf32>
    %49 = vector.extract_strided_slice %22 {offsets = [0, 0], sizes = [8, 32], strides = [1, 1]} : vector<8x96xf32> to vector<8x32xf32>
    %50 = vector.extract_strided_slice %48 {offsets = [0, 0], sizes = [8, 1], strides = [1, 1]} : vector<8x3xf32> to vector<8x1xf32>
    %51 = vector.broadcast %50 : vector<8x1xf32> to vector<8x32xf32>
    %52 = arith.mulf %49, %51 : vector<8x32xf32>
    %53 = vector.extract_strided_slice %22 {offsets = [0, 32], sizes = [8, 32], strides = [1, 1]} : vector<8x96xf32> to vector<8x32xf32>
    %54 = vector.extract_strided_slice %48 {offsets = [0, 1], sizes = [8, 1], strides = [1, 1]} : vector<8x3xf32> to vector<8x1xf32>
    %55 = vector.broadcast %54 : vector<8x1xf32> to vector<8x32xf32>
    %56 = arith.mulf %53, %55 : vector<8x32xf32>
    %57 = arith.addf %52, %56 : vector<8x32xf32>
    %58 = vector.extract_strided_slice %22 {offsets = [0, 64], sizes = [8, 32], strides = [1, 1]} : vector<8x96xf32> to vector<8x32xf32>
    %59 = vector.extract_strided_slice %48 {offsets = [0, 2], sizes = [8, 1], strides = [1, 1]} : vector<8x3xf32> to vector<8x1xf32>
    %60 = vector.broadcast %59 : vector<8x1xf32> to vector<8x32xf32>
    %61 = arith.mulf %58, %60 : vector<8x32xf32>
    %62 = arith.addf %57, %61 : vector<8x32xf32>
    %c0_25 = arith.constant 0 : index
    %c0_26 = arith.constant 0 : index
    %63 = vector.load %arg5[%c0_25, %c0_26] : memref<32x128xf32, #tpu.memory_space<vmem>>, vector<32x128xf32>
    %cst_27 = arith.constant dense<0.000000e+00> : vector<8x128xf32>
    %64 = tpu.matmul %62, %63, %cst_27 {dimension_numbers = #tpu.dot_dimension_numbers<[1], [0], [0], [1], [0, 0, 1, 1], [], []>} : vector<8x32xf32>, vector<32x128xf32>, vector<8x128xf32> -> vector<8x128xf32>
    %65 = vector.extract_strided_slice %0 {offsets = [7, 0], sizes = [1, 128], strides = [1, 1]} : vector<8x128xf32> to vector<1x128xf32>
    %66 = vector.broadcast %65 : vector<1x128xf32> to vector<8x128xf32>
    %67 = arith.addf %64, %66 : vector<8x128xf32>
    %c0_28 = arith.constant 0 : index
    %c0_29 = arith.constant 0 : index
    %68 = vector.load %arg7[%c0_28, %c0_29] : memref<8x128xf32, #tpu.memory_space<vmem>>, vector<8x128xf32>
    tpu.vector_store %arg7[%c0_28, %c0_29], %67 {strides = array<i32>} : memref<8x128xf32, #tpu.memory_space<vmem>>, vector<8x128xf32>,
    return
  }
  func.func @transform_0(%arg0: i32) -> (i32, i32) {
    %c0_i32 = arith.constant 0 : i32
    %c0_i32_0 = arith.constant 0 : i32
    return %arg0, %c0_i32 : i32, i32
  }
  func.func @transform_1(%arg0: i32) -> (i32, i32) {
    %c0_i32 = arith.constant 0 : i32
    %c0_i32_0 = arith.constant 0 : i32
    %c0_i32_1 = arith.constant 0 : i32
    return %c0_i32, %c0_i32_0 : i32, i32
  }
  func.func @transform_2(%arg0: i32) -> (i32, i32) {
    %c0_i32 = arith.constant 0 : i32
    %c0_i32_0 = arith.constant 0 : i32
    %c0_i32_1 = arith.constant 0 : i32
    return %c0_i32, %c0_i32_0 : i32, i32
  }
  func.func @transform_3(%arg0: i32) -> (i32, i32) {
    %c0_i32 = arith.constant 0 : i32
    %c0_i32_0 = arith.constant 0 : i32
    %c0_i32_1 = arith.constant 0 : i32
    return %c0_i32, %c0_i32_0 : i32, i32
  }
  func.func @transform_4(%arg0: i32) -> (i32, i32) {
    %c0_i32 = arith.constant 0 : i32
    %c0_i32_0 = arith.constant 0 : i32
    %c0_i32_1 = arith.constant 0 : i32
    return %c0_i32, %c0_i32_0 : i32, i32
  }
  func.func @transform_5(%arg0: i32) -> (i32, i32) {
    %c0_i32 = arith.constant 0 : i32
    %c0_i32_0 = arith.constant 0 : i32
    %c0_i32_1 = arith.constant 0 : i32
    return %c0_i32, %c0_i32_0 : i32, i32
  }
  func.func @transform_6(%arg0: i32) -> (i32, i32) {
    %c0_i32 = arith.constant 0 : i32
    %c0_i32_0 = arith.constant 0 : i32
    return %arg0, %c0_i32 : i32, i32
  }
}

</mosaic_0001>

<bundles_post_ra>
// kernel: tpu_custom_call.1
= control target key start
LH: loop header
LB: loop body
LE: loop exit
PB: predicated region body
PF: predicated region fallthrough
CT: control target
= control target key end

     0   :  { %11 = vsyncpa [#allocation3], 0  ;;  %s1385_s0 = inlined_call_operand.vmem [shape: f32[8,72], index: 0, kind: input, shape index: {}]   ;;  %s1386_s1 = inlined_call_operand.hbm [shape: f32[264,96], index: 1, kind: input, shape index: {}]   ;;  %s1387_s2 = inlined_call_operand.vmem [shape: f32[160,32], index: 2, kind: input, shape index: {}]   ;;  %s1388_s3 = inlined_call_operand.vmem [shape: f32[32,3], index: 3, kind: input, shape index: {}]   ;;  %s1389_s4 = inlined_call_operand.vmem [shape: f32[32,128], index: 4, kind: input, shape index: {}]   ;;  %s1390_s5 = inlined_call_operand.vmem [shape: f32[8,128], index: 5, kind: input, shape index: {}]   ;;  %s1391_s6 = inlined_call_operand.hbm [shape: f32[8,128], index: 6, kind: output, shape index: {}]  }
   0x1   :  { %12 = vsyncpa [#allocation4], 0  ;;  %s1144_s21 = smov [#allocation2]   ;;  %s1096_s25 = scalar_lea.hbm %s1386_s1, 4224 }
   0x2   :  { %s20_s22 = sshll.u32 %s1144_s21, 4  ;;  %p1097_p0 = scmp.ne.s32.totalorder %s1386_s1, %s1096_s25  ;;  %s21_s22 = int_to_ptr.vmem [resolvable:$true] %s20_s22 }
   0x3   :  { %p1100_p1 = scmp.lt.u32.totalorder %s1096_s25, %s1386_s1 }
   0x5   :  { %p1102_p2 = pnand %p1100_p1, %p1097_p0 }
   0x7   :  { %1105 = shalt.err (!%p1102_p2)
}
   0x8   :  { %s1106_s30 = scalar_lea.vmem %s21_s22, 4224  ;;  %p1111_p4 = scmp.lt.s32.totalorder %s21_s22, %s21_s22 }
   0x9   :  { %p1107_p3 = scmp.ne.s32.totalorder %s21_s22, %s1106_s30  ;;  %p1112_p5 = scmp.lt.s32.totalorder %s1106_s30, %s1106_s30 }
   0xb   :  { %p1113_p6 = por %p1112_p5, %p1111_p4 }
   0xd   :  { %p1114_p7 = pnand %p1113_p6, %p1107_p3 }
   0xf   :  { %1117 = shalt.err (!%p1114_p7)
}
  0x10   :  { %s1145_s7 = smov 128   ;;  %s1146_s8 = smov 8  }
  0x11   :  { %26 = dma.hbm_to_vmem [thread:$0]  %s1386_s1, 4224, %s21_s22, [#allocation3], %s1145_s7, %s1145_s7, %s1146_s8  }
  0x12   :  { %1140 = dma.done.wait [#allocation3], 4224  }
  0x13   :  { %1141 = vsyncadd [#allocation3], 4294963072  ;;  %v1147_v0 = vmov 0.0|0.0   ;;  %vm1148_vm0 = vmmov 0   ;;  %v1149_v1 = vmov 0.0   ;;  %v40_v2 = vld [vmem:[#allocation2] sm:$0xff]  ;;  %v49_v49 = vlaneseq }
  0x14   :  { %991 = vmatprep.subr.bf16.mxu0 %v1147_v0  ;;  %863 = vmatprep.mubr.msk.f32.mxu0 %vm1148_vm0, %v1149_v1  ;;  %v41_v3 = vld [vmem:[#allocation2 + $0x8] sm:$0xff]  ;;  %v42_v4 = vld [vmem:[#allocation2 + $0x10] sm:$0xff]  ;;  %v43_v6 = vld [vmem:[#allocation2 + $0x18] sm:$0xff]  ;;  %vm53_vm1 = vcmask 588800   ;;  %vm144_vm2 = vcmask 785408   ;;  %vm407_vm3 = vcmask 261120  }
  0x15   :  { %1003 = vmatprep.subr.bf16.mxu1 %v1147_v0  ;;  %890 = vmatprep.mubr.msk.f32.mxu1 %vm1148_vm0, %v1149_v1  ;;  %v992_v5 = vpack.c.bf16 %v41_v3, %v40_v2  ;;  %v995_v7 = vpack.c.bf16 %v43_v6, %v42_v4  ;;  %v44_v8 = vld [vmem:[#allocation2 + $0x20] sm:$0xff]  ;;  %v128_v9 = vld [vmem:[#allocation2 + $0x48] sm:$0xff]  ;;  %v129_v10 = vld [vmem:[#allocation2 + $0x50] sm:$0xff]  ;;  %v1230_v50 = vshrl.u32 %v49_v49, 7  ;;  %s1154_s13 = smov 64  }
  0x16   :  { %v45_v11 = vld [vmem:[#allocation2 + $0x28] sm:$0xff]  ;;  %v1004_v12 = vpack.c.bf16 %v129_v10, %v128_v9  ;;  %v130_v13 = vld [vmem:[#allocation2 + $0x58] sm:$0xff]  ;;  %v131_v14 = vld [vmem:[#allocation2 + $0x60] sm:$0xff] }
  0x17   :  { %993 = vmatpush3.bf16.msra.mxu0 %v992_v5  ;;  %v1007_v15 = vpack.c.bf16 %v131_v14, %v130_v13  ;;  %v998_v16 = vpack.c.bf16 %v45_v11, %v44_v8  ;;  %v132_v17 = vld [vmem:[#allocation2 + $0x68] sm:$0xff]  ;;  %v133_v18 = vld [vmem:[#allocation2 + $0x70] sm:$0xff]  ;;  %v47_v20 = vld [vmem:[#allocation2 + $0x38] sm:$0xff]  ;;  %v51_v51 = vsub.s32 0, %v1230_v50  ;;  %v142_v14 = vsub.s32 1, %v1230_v50 }
  0x18   :  { %994 = vmatprep.subr.bf16.mxu0 %v1147_v0  ;;  %1005 = vmatpush3.bf16.msra.mxu1 %v1004_v12  ;;  %v46_v19 = vld [vmem:[#allocation2 + $0x30] sm:$0xff]  ;;  %v1010_v21 = vpack.c.bf16 %v133_v18, %v132_v17  ;;  %v134_v23 = vld [vmem:[#allocation2 + $0x78] sm:$0xff]  ;;  %v135_v24 = vld [vmem:[#allocation2 + $0x80] sm:$0xff] }
  0x19   :  { %1006 = vmatprep.subr.bf16.mxu1 %v1147_v0  ;;  %v1001_v22 = vpack.c.bf16 %v47_v20, %v46_v19  ;;  %v1013_v25 = vpack.c.bf16 %v135_v24, %v134_v23  ;;  %v136_v26 = vld [vmem:[#allocation2 + $0x88] sm:$0xff]  ;;  %v137_v27 = vld [vmem:[#allocation2 + $0x90] sm:$0xff]  ;;  %v48_v28 = vld [vmem:[#allocation2 + $0x40] sm:$0xff] }
  0x1a   :  { %v39_v29 = vld [vmem:[%s1385_s0] sm:$0xff]  ;;  %v1016_v30 = vpack.c.bf16 %v137_v27, %v136_v26  ;;  %v138_v31 = vld [vmem:[#allocation2 + $0x98] sm:$0xff]  ;;  %v219_v34 = vld [vmem:[#allocation2 + $0xa8] sm:$0xff]  ;;  %v233_v26 = vsub.s32 2, %v1230_v50 }
  0x1b   :  { %996 = vmatpush3.bf16.msra.mxu0 %v995_v7  ;;  %v139_v32 = vld [vmem:[#allocation2 + $0xa0] sm:$0xff]  ;;  %v220_v35 = vld [vmem:[#allocation2 + $0xb0] sm:$0xff]  ;;  %v221_v36 = vld [vmem:[#allocation2 + $0xb8] sm:$0xff] }
  0x1c   :  { %997 = vmatprep.subr.bf16.mxu0 %v1147_v0  ;;  %1008 = vmatpush3.bf16.msra.mxu1 %v1007_v15  ;;  %v1019_v33 = vpack.c.bf16 %v139_v32, %v138_v31  ;;  %v1022_v37 = vpack.c.bf16 %v220_v35, %v219_v34  ;;  %v222_v38 = vld [vmem:[#allocation2 + $0xc0] sm:$0xff]  ;;  %v223_v40 = vld [vmem:[#allocation2 + $0xc8] sm:$0xff]  ;;  %v224_v41 = vld [vmem:[#allocation2 + $0xd0] sm:$0xff] }
  0x1d   :  { %1009 = vmatprep.subr.bf16.mxu1 %v1147_v0  ;;  %v1025_v39 = vpack.c.bf16 %v222_v38, %v221_v36  ;;  %v1028_v42 = vpack.c.bf16 %v224_v41, %v223_v40  ;;  %v225_v43 = vld [vmem:[#allocation2 + $0xd8] sm:$0xff]  ;;  %v226_v44 = vld [vmem:[#allocation2 + $0xe0] sm:$0xff]  ;;  %v227_v46 = vld [vmem:[#allocation2 + $0xe8] sm:$0xff]  ;;  %v323_v38 = vsub.s32 3, %v1230_v50 }
  0x1e   :  { %v1031_v45 = vpack.c.bf16 %v226_v44, %v225_v43  ;;  %v228_v47 = vld [vmem:[#allocation2 + $0xf0] sm:$0xff]  ;;  %v1236_v52 = vld [vmem:[%s1390_s5] sm:$0xff]  ;;  %v229_v58 = vld [vmem:[#allocation2 + $0xf8] sm:$0xff]  ;;  %s1153_s5 = smov 96  }
  0x1f   :  { %999 = vmatpush3.bf16.msra.mxu0 %v998_v16  ;;  %v1034_v48 = vpack.c.bf16 %v228_v47, %v227_v46  ;;  %v52_v53 = vrot.slane %v1236_v52, %v51_v51  ;;  %v230_v59 = vld [vmem:[#allocation2 + $0x100] sm:$0xff]  ;;  %v310_v62 = vld [vmem:[%s1387_s2 + $0x8] sm:$0xff]  ;;  %v311_v63 = vld [vmem:[%s1387_s2 + $0x10] sm:$0xff]  ;;  %v143_v15 = vrot.slane %v1236_v52, %v142_v14  ;;  %v234_v27 = vrot.slane %v1236_v52, %v233_v26 }
  0x20   :  { %1000 = vmatprep.subr.bf16.mxu0 %v1147_v0  ;;  %1011 = vmatpush3.bf16.msra.mxu1 %v1010_v21  ;;  %v1037_v60 = vpack.c.bf16 %v230_v59, %v229_v58  ;;  %v309_v61 = vld [vmem:[%s1387_s2] sm:$0xff]  ;;  %v312_v3 = vld [vmem:[%s1387_s2 + $0x18] sm:$0xff]  ;;  %v314_v6 = vld [vmem:[%s1387_s2 + $0x28] sm:$0xff]  ;;  %v405_v51 = vsub.s32 4, %v1230_v50 }
  0x21   :  { %1012 = vmatprep.subr.bf16.mxu1 %v1147_v0  ;;  %v1040_v2 = vpack.c.bf16 %v310_v62, %v309_v61  ;;  %v1043_v4 = vpack.c.bf16 %v312_v3, %v311_v63  ;;  %v313_v5 = vld [vmem:[%s1387_s2 + $0x20] sm:$0xff]  ;;  %v315_v8 = vld [vmem:[%s1387_s2 + $0x30] sm:$0xff]  ;;  %v316_v9 = vld [vmem:[%s1387_s2 + $0x38] sm:$0xff]  ;;  %v488_v61 = vsub.s32 5, %v1230_v50 }
  0x22   :  { %v1046_v7 = vpack.c.bf16 %v314_v6, %v313_v5  ;;  %v1049_v10 = vpack.c.bf16 %v316_v9, %v315_v8  ;;  %v317_v11 = vld [vmem:[%s1387_s2 + $0x40] sm:$0xff]  ;;  %v318_v12 = vld [vmem:[%s1387_s2 + $0x48] sm:$0xff]  ;;  %v319_v20 = vld [vmem:[%s1387_s2 + $0x50] sm:$0xff]  ;;  %v1151_v5 = vmov 0   ;;  %v570_v6 = vsub.s32 6, %v1230_v50 }
  0x23   :  { %1002 = vmatpush3.bf16.msra.mxu0 %v1001_v22  ;;  %v1052_v13 = vpack.c.bf16 %v318_v12, %v317_v11  ;;  %v320_v21 = vld [vmem:[%s1387_s2 + $0x58] sm:$0xff]  ;;  %v399_v23 = vld [vmem:[%s1387_s2 + $0x60] sm:$0xff]  ;;  %v400_v24 = vld [vmem:[%s1387_s2 + $0x68] sm:$0xff]  ;;  %v489_v62 = vrot.slane %v1236_v52, %v488_v61  ;;  %1095 = vset.pattern.permute.xlu1 %v1151_v5  ;;  %v1152_v11 = vmov 2  }
  0x24   :  { %861 = vmatprep.subr.mxu0 %v1149_v1  ;;  %1014 = vmatpush3.bf16.msra.mxu1 %v1013_v25  ;;  %v1055_v22 = vpack.c.bf16 %v320_v21, %v319_v20  ;;  %v1058_v25 = vpack.c.bf16 %v400_v24, %v399_v23  ;;  %v401_v32 = vld [vmem:[%s1387_s2 + $0x70] sm:$0xff]  ;;  %v482_v35 = vld [vmem:[%s1387_s2 + $0x80] sm:$0xff]  ;;  %v483_v36 = vld [vmem:[%s1387_s2 + $0x88] sm:$0xff] }
  0x25   :  { %1015 = vmatprep.subr.bf16.mxu1 %v1147_v0  ;;  %v484_v44 = vld [vmem:[%s1387_s2 + $0x90] sm:$0xff]  ;;  %v564_v47 = vld [vmem:[%s1388_s3] sm:$0xff]  ;;  %v567_v59 = vld [vmem:[%s1388_s3 + $0x18] sm:$0xff] }
  0x26   :  { %v566_v58 = vld [vmem:[%s1388_s3 + $0x10] sm:$0xff]  ;;  %v671_v12 = vld [vmem:[%s1389_s4] sm:$0xff] }
  0x27   :  { %862 = vmatpush3.msra.mxu0 %v48_v28 }
  0x28   :  { %864 = vmatmul.mubr.msk.f32.vlgmr.msra.gmra.mrb[0].mxu0 %vm53_vm1, %v39_v29  ;;  %1021 = vmatprep.subr.bf16.mxu0 %v1147_v0 }
  0x29   :  { %917 = vmatprep.mubr.msk.f32.mxu0 %vm1148_vm0, %v1149_v1  ;;  %1017 = vmatpush3.bf16.msra.mxu1 %v1016_v30 }
  0x2a   :  { %1018 = vmatprep.subr.bf16.mxu1 %v1147_v0  ;;  %1023 = vmatpush3.bf16.msra.mxu0 %v1022_v37  ;;  %v1064_v37 = vpack.c.bf16 %v483_v36, %v482_v35 }
  0x2b   :  { %1024 = vmatprep.subr.bf16.mxu0 %v1147_v0 }
  0x2d   :  { %1020 = vmatpush3.bf16.msra.mxu1 %v1019_v33  ;;  %v402_v33 = vld [vmem:[%s1387_s2 + $0x78] sm:$0xff] }
  0x2e   :  { %1039 = vmatprep.subr.bf16.mxu1 %v1147_v0  ;;  %1026 = vmatpush3.bf16.msra.mxu0 %v1025_v39  ;;  %v1061_v34 = vpack.c.bf16 %v402_v33, %v401_v32  ;;  %v324_v39 = vrot.slane %v1236_v52, %v323_v38 }
  0x2f   :  { %1027 = vmatprep.subr.bf16.mxu0 %v1147_v0 }
  0x32   :  { %1029 = vmatpush3.bf16.msra.mxu0 %v1028_v42 }
  0x33   :  { %1030 = vmatprep.subr.bf16.mxu0 %v1147_v0 }
  0x36   :  { %1032 = vmatpush3.bf16.msra.mxu0 %v1031_v45  ;;  %v485_v45 = vld [vmem:[%s1387_s2 + $0x98] sm:$0xff] }
  0x37   :  { %1033 = vmatprep.subr.bf16.mxu0 %v1147_v0  ;;  %v1067_v46 = vpack.c.bf16 %v485_v45, %v484_v44 }
  0x3a   :  { %1035 = vmatpush3.bf16.msra.mxu0 %v1034_v48  ;;  %v565_v48 = vld [vmem:[%s1388_s3 + $0x8] sm:$0xff] }
  0x3b   :  { %1036 = vmatprep.subr.bf16.mxu0 %v1147_v0  ;;  %v1070_v49 = vpack.c.bf16 %v565_v48, %v564_v47 }
  0x3e   :  { %1038 = vmatpush3.bf16.msra.mxu0 %v1037_v60  ;;  %v1073_v60 = vpack.c.bf16 %v567_v59, %v566_v58 }
  0x3f   :  { %1057 = vmatprep.subr.bf16.mxu0 %v1147_v0 }
  0xfb   :  { %v123_v54 = vpop.f32.mrb[0].mxu0 }
  0xfc   :  { %v124_v55 = vadd.f32 %v123_v54, %v52_v53  ;;  %v865_v56 = vpop.f32.mrb[1].mxu0  ;;  %v406_v53 = vrot.slane %v1236_v52, %v405_v51 }
  0xfe   :  { %v127_v57 = vmax.f32 %v124_v55, 0.0 }
 0x100   :  { %891 = vmatmul.mubr.msk.f32.vlgmr.msra.gmra.mrb[0].mxu1 %vm144_vm2, %v127_v57 }
 0x101   :  { %944 = vmatprep.mubr.msk.f32.mxu1 %vm1148_vm0, %v1149_v1  ;;  %1041 = vmatpush3.bf16.msra.mxu1 %v1040_v2 }
 0x102   :  { %1042 = vmatprep.subr.bf16.mxu1 %v1147_v0 }
 0x105   :  { %1044 = vmatpush3.bf16.msra.mxu1 %v1043_v4 }
 0x106   :  { %1045 = vmatprep.subr.bf16.mxu1 %v1147_v0 }
 0x109   :  { %1047 = vmatpush3.bf16.msra.mxu1 %v1046_v7  ;;  %v571_v7 = vrot.slane %v1236_v52, %v570_v6 }
 0x10a   :  { %1048 = vmatprep.subr.bf16.mxu1 %v1147_v0 }
 0x10d   :  { %1050 = vmatpush3.bf16.msra.mxu1 %v1049_v10 }
 0x10e   :  { %1051 = vmatprep.subr.bf16.mxu1 %v1147_v0 }
 0x111   :  { %1053 = vmatpush3.bf16.msra.mxu1 %v1052_v13  ;;  %v672_v13 = vld [vmem:[%s1389_s4 + $0x8] sm:$0xff] }
 0x112   :  { %1054 = vmatprep.subr.bf16.mxu1 %v1147_v0  ;;  %v1076_v14 = vpack.c.bf16 %v672_v13, %v671_v12 }
 0x115   :  { %1056 = vmatpush3.bf16.msra.mxu1 %v1055_v22 }
 0x116   :  { %1063 = vmatprep.subr.bf16.mxu1 %v1147_v0 }
 0x1d3   :  { %v214_v16 = vpop.f32.mrb[0].mxu1 }
 0x1d4   :  { %v215_v17 = vadd.f32 %v214_v16, %v143_v15  ;;  %v892_v18 = vpop.f32.mrb[1].mxu1  ;;  %v673_v15 = vld [vmem:[%s1389_s4 + $0x10] sm:$0xff]  ;;  %v674_v16 = vld [vmem:[%s1389_s4 + $0x18] sm:$0xff]  ;;  %s1155_s4 = smov [#allocation5]  }
 0x1d5   :  { %s759_s14 = sshll.u32 %s1155_s4, 4  ;;  %s760_s14 = int_to_ptr.vmem [resolvable:$true] %s759_s14 }
 0x1d6   :  { %v218_v19 = vmax.f32 %v215_v17, 0.0  ;;  %v1079_v17 = vpack.c.bf16 %v674_v16, %v673_v15  ;;  %s1118_s15 = scalar_lea.vmem %s760_s14, 128  ;;  %p1123_p9 = scmp.lt.s32.totalorder %s760_s14, %s760_s14 }
 0x1d7   :  { %p1119_p8 = scmp.ne.s32.totalorder %s760_s14, %s1118_s15  ;;  %p1124_p10 = scmp.lt.s32.totalorder %s1118_s15, %s1118_s15 }
 0x1d8   :  { %918 = vmatmul.mubr.msk.f32.vlgmr.msra.gmra.mrb[2].mxu0 %vm144_vm2, %v218_v19 }
 0x1d9   :  { %955 = vmatprep.mubr.msk.f32.mxu0 %vm1148_vm0, %v1149_v1  ;;  %1059 = vmatpush3.bf16.msra.mxu0 %v1058_v25  ;;  %p1125_p11 = por %p1124_p10, %p1123_p9 }
 0x1da   :  { %1060 = vmatprep.subr.bf16.mxu0 %v1147_v0 }
 0x1db   :  { %p1126_p12 = pnand %p1125_p11, %p1119_p8 }
 0x1dd   :  { %1062 = vmatpush3.bf16.msra.mxu0 %v1061_v34 }
 0x1de   :  { %1069 = vmatprep.subr.bf16.mxu0 %v1147_v0 }
 0x2ab   :  { %v304_v28 = vpop.f32.mrb[2].mxu0 }
 0x2ac   :  { %v305_v29 = vadd.f32 %v304_v28, %v234_v27  ;;  %v919_v30 = vpop.f32.mrb[3].mxu0 }
 0x2ae   :  { %v1299_v31 = vmax.f32 %v305_v29, 0.0 }
 0x2b0   :  { %945 = vmatmul.mubr.msk.f32.vlgmr.msra.gmra.mrb[2].mxu1 %vm144_vm2, %v1299_v31 }
 0x2b1   :  { %966 = vmatprep.mubr.msk.f32.mxu1 %vm1148_vm0, %v1149_v1  ;;  %1065 = vmatpush3.bf16.msra.mxu1 %v1064_v37 }
 0x2b2   :  { %1066 = vmatprep.subr.bf16.mxu1 %v1147_v0 }
 0x2b5   :  { %1068 = vmatpush3.bf16.msra.mxu1 %v1067_v46 }
 0x2b6   :  { %1075 = vmatprep.subr.bf16.mxu1 %v1147_v0 }
 0x383   :  { %v394_v40 = vpop.f32.mrb[2].mxu1 }
 0x384   :  { %v395_v41 = vadd.f32 %v394_v40, %v324_v39  ;;  %v946_v42 = vpop.f32.mrb[3].mxu1 }
 0x386   :  { %v398_v43 = vmax.f32 %v395_v41, 0.0 }
 0x388   :  { %956 = vmatmul.mubr.msk.f32.vlgmr.msra.gmra.mrb[4].mxu0 %vm407_vm3, %v398_v43 }
 0x389   :  { %977 = vmatprep.mubr.msk.f32.mxu0 %vm1148_vm0, %v1149_v1  ;;  %1071 = vmatpush3.bf16.msra.mxu0 %v1070_v49 }
 0x38a   :  { %1072 = vmatprep.subr.bf16.mxu0 %v1147_v0 }
 0x38d   :  { %1074 = vmatpush3.bf16.msra.mxu0 %v1073_v60 }
 0x45b   :  { %v477_v54 = vpop.f32.mrb[4].mxu0 }
 0x45c   :  { %v478_v55 = vadd.f32 %v477_v54, %v406_v53  ;;  %v957_v56 = vpop.f32.mrb[5].mxu0 }
 0x45e   :  { %v481_v57 = vmax.f32 %v478_v55, 0.0 }
 0x460   :  { %967 = vmatmul.mubr.msk.f32.vlgmr.msra.gmra.mrb[4].mxu1 %vm407_vm3, %v481_v57 }
 0x461   :  { %988 = vmatprep.mubr.msk.f32.mxu1 %vm1148_vm0, %v1149_v1  ;;  %v1150_v1 = vmov 1   ;;  %1077 = vmatpush3.bf16.msra.mxu1 %v1076_v14 }
 0x462   :  { %1093 = vset.pattern.permute.xlu0 %v1150_v1  ;;  %1078 = vmatprep.subr.bf16.mxu1 %v1147_v0  ;;  %v677_v0 = vsub.s32 7, %v1230_v50 }
 0x464   :  { %v678_v28 = vrot.slane %v1236_v52, %v677_v0 }
 0x465   :  { %1080 = vmatpush3.bf16.msra.mxu1 %v1079_v17 }
 0x533   :  { %v559_v63 = vpop.f32.mrb[4].mxu1 }
 0x534   :  { %v560_v2 = vadd.f32 %v559_v63, %v489_v62  ;;  %v968_v3 = vpop.f32.mrb[5].mxu1 }
 0x536   :  { %v563_v4 = vmax.f32 %v560_v2, 0.0 }
 0x538   :  { %978 = vmatmul.mubr.msk.f32.vlgmr.msra.gmra.mrb[6].mxu0 %vm407_vm3, %v563_v4 }
 0x60b   :  { %v641_v8 = vpop.f32.mrb[6].mxu0 }
 0x60c   :  { %v642_v9 = vadd.f32 %v641_v8, %v571_v7  ;;  %v979_v10 = vpop.f32.mrb[7].mxu0 }
 0x60e   :  { %647 = vperm.xlu1 %1095, %v642_v9   ;;  %652 = vperm.xlu0 %1093, %v642_v9  }
 0x612   :  { %1094 = vset.pattern.permute.xlu0 %v1152_v11 }
 0x613   :  { %662 = vperm.xlu0 %1094, %v642_v9  }
 0x68d   :  { %v653_v18 = vpop.permute.xlu0 %652  ;;  %v648_v22 = vpop.permute.xlu1 %647 }
 0x68e   :  { %v655_v19 = vmul.f32 %v653_v18, %v1299_v31  ;;  %v650_v24 = vmul.f32 %v648_v22, %v1299_v31 }
 0x690   :  { %657 = vrot.lane.b32.xlu1 %v655_v19, %s1153_s5 }
 0x692   :  { %v663_v20 = vpop.permute.xlu0 %662 }
 0x693   :  { %v665_v21 = vmul.f32 %v663_v20, %v1299_v31 }
 0x695   :  { %667 = vrot.lane.b32.xlu1 %v665_v21, %s1154_s13 }
 0x702   :  { %v658_v23 = vpop.permute.xlu1 %657 }
 0x703   :  { %v660_v25 = vadd.f32 %v658_v23, %v650_v24 }
 0x707   :  { %v668_v26 = vpop.permute.xlu1 %667 }
 0x708   :  { %v670_v27 = vadd.f32 %v668_v26, %v660_v25 }
 0x70a   :  { %989 = vmatmul.mubr.msk.f32.vlgmr.msra.gmra.mrb[6].mxu1 %vm407_vm3, %v670_v27 }
 0x7dd   :  { %v748_v29 = vpop.f32.mrb[6].mxu1 }
 0x7de   :  { %v749_v30 = vadd.f32 %v748_v29, %v678_v28  ;;  %v990_v32 = vpop.f32.mrb[7].mxu1 }
 0x7e0   :  { %752 = vst [vmem:[#allocation5] sm:$0xff] %v749_v30 }
 0x7e1   :  { %1129 = shalt.err (!%p1126_p12)
}
 0x7e2   :  { %s1130_s18 = scalar_lea.hbm %s1391_s6, 128 }
 0x7e3   :  { %p1131_p13 = scmp.ne.s32.totalorder %s1391_s6, %s1130_s18  ;;  %p1134_p0 = scmp.lt.u32.totalorder %s1130_s18, %s1391_s6 }
 0x7e5   :  { %p1136_p1 = pnand %p1134_p0, %p1131_p13 }
 0x7e7   :  { %1139 = shalt.err (!%p1136_p1)
}
 0x7e8   :  { %762 = dma.vmem_to_hbm [thread:$0]  %s760_s14, 128, %s1391_s6, [#allocation4]  }
 0x7e9   :  { %1142 = dma.done.wait [#allocation4], 128  }
 0x7ea   :  { %1143 = vsyncadd [#allocation4], 4294967168 }
 0x7eb   :  { %766 = vsyncpa [#allocation3], 1 }
 0x7ec   :  { %767 = vsyncpa [#allocation4], 1 }

</bundles_post_ra>
